<compile_context>
chip_gen: v5e
topology: v5e:2x2
jax: 0.10.0
libtpu: 0.0.40
codegen_flags: <defaults>
</compile_context>

<pallas_src>
import jax
import jax.numpy as jnp
from jax import lax
from jax.experimental import pallas as pl
from jax.experimental.pallas import tpu as pltpu

LANE = 128


# ---------------------------------------------------------------------------
# Deterministic parameter construction (matches nn.Conv2d(in, out, kernel=1))
# ---------------------------------------------------------------------------
def init_params(key, in_channels, out_channels):
    kw, kb = jax.random.split(key, 2)
    w_oihw = 0.2 * jax.random.normal(
        kw, (out_channels, in_channels, 1, 1), jnp.float32)
    b = 0.1 * jax.random.normal(kb, (out_channels,), jnp.float32)
    return {"w": w_oihw.reshape(out_channels, in_channels), "b": b}


# ---------------------------------------------------------------------------
# Pallas kernel: one (Cout,Cin) x (Bb,Cin,tile_p) batched matmul + bias
# ---------------------------------------------------------------------------
def _outconv_kernel(x_ref, w_ref, b_ref, o_ref):
    # x_ref: (Bb, Cin, tile_p)   w_ref: (Cout, Cin)   b_ref: (Cout, 1) f32
    y = jnp.einsum("oc,bcp->bop", w_ref[...], x_ref[...],
                   preferred_element_type=jnp.float32)
    o_ref[...] = (y + b_ref[...][None, :, :]).astype(o_ref.dtype)


# ---------------------------------------------------------------------------
# Tiling selection: byte-budgeted, generation-aware, >=2 grid steps
# ---------------------------------------------------------------------------
def _divisors(n):
    return [d for d in range(1, n + 1) if n % d == 0]


def _choose_tiles(B, Cin, Cout, P_pad, x_item, out_item):
    # Physical VMEM per TensorCore (v5e/v6e: 128 MiB, v7x: 64 MiB).
    try:
        vmem_cap = int(pltpu.get_tpu_info().vmem_capacity_bytes)
    except Exception:
        vmem_cap = 64 << 20  # conservative fallback (v7x size)

    # ~2 MiB of x per grid step hits 85%+ of HBM roofline in measured tiled
    # copies; never exceed 1/8 of physical VMEM so the double-buffered
    # pipeline (x + out blocks, 2 buffers each) stays comfortable.
    x_block_budget = min(2 << 20, vmem_cap // 8)

    m = P_pad // LANE                        # number of 128-lane columns
    per_col_x = max(1, Cin * LANE * x_item)  # x bytes per column at Bb=1
    max_cols = max(1, min(m, x_block_budget // per_col_x))
    d = max_cols
    while m % d != 0:                        # tile must divide the padded row
        d -= 1
    # Keep >= 2 grid steps when possible so both v7x TensorCores get work.
    if B * (m // d) < 2 and m >= 2:
        d2 = m // 2
        while m % d2 != 0:
            d2 -= 1
        d = d2
    tile_p = d * LANE
    n_p = m // d

    # If one spatial tile already covers the whole image, pack several batch
    # elements per grid step (amortizes the ~600-cycle per-step overhead),
    # but keep at least min(4, B*n_p) grid steps for megacore parallelism.
    Bb = 1
    if n_p == 1:
        min_steps = min(4, B * n_p)
        for cand in _divisors(B):            # ascending -> ends at largest OK
            if (cand * Cin * tile_p * x_item <= x_block_budget
                    and (B // cand) * n_p >= min_steps):
                Bb = cand

    # Pipeline footprint: double-buffered x and out blocks + resident w/b.
    footprint = (2 * Bb * Cin * tile_p * x_item
                 + 2 * Bb * Cout * tile_p * out_item
                 + Cout * Cin * x_item + Cout * 4)
    # Raise the scoped VMEM limit (v5e default is 16 MiB) with headroom, but
    # stay well under physical capacity (important on v7x: 64 MiB).
    vmem_limit = int(min(vmem_cap * 3 // 4, max(2 * footprint, 32 << 20)))
    return tile_p, Bb, vmem_limit


# ---------------------------------------------------------------------------
# Forward wrapper (PyTorch NCHW layout in and out)
# ---------------------------------------------------------------------------
def outconv_forward(params, x_nchw):
    B, Cin, H, W = x_nchw.shape
    w = params["w"]
    b = params["b"]
    Cout = w.shape[0]

    x_dtype = x_nchw.dtype
    out_dtype = x_dtype
    x_item = jnp.dtype(x_dtype).itemsize
    out_item = jnp.dtype(out_dtype).itemsize

    # Flatten spatial dims to a lane-dense last axis; pad up to a multiple of
    # 128 so every store is an unmasked full-lane vst (pad sliced off below).
    P = H * W
    P_pad = -(-P // LANE) * LANE
    x = x_nchw.reshape(B, Cin, P)
    if P_pad != P:
        x = jnp.pad(x, ((0, 0), (0, 0), (0, P_pad - P)))

    # Native-dtype MXU operands (bf16-native on v5e/v6e/v7x); f32 bias is
    # added to the f32 accumulator before the final cast.
    w_c = w.astype(x_dtype)
    b2 = b.astype(jnp.float32).reshape(Cout, 1)

    tile_p, Bb, vmem_limit = _choose_tiles(B, Cin, Cout, P_pad, x_item, out_item)
    n_p = P_pad // tile_p
    n_b = B // Bb

    cost = pl.CostEstimate(
        flops=2 * B * P * Cin * Cout,
        transcendentals=0,
        bytes_accessed=(x_item * B * Cin * P_pad          # read x
                        + x_item * Cout * Cin + 4 * Cout  # read w, b
                        + out_item * B * Cout * P_pad),   # write out
    )

    out_flat = pl.pallas_call(
        _outconv_kernel,
        out_shape=jax.ShapeDtypeStruct((B, Cout, P_pad), out_dtype),
        grid_spec=pltpu.PrefetchScalarGridSpec(
            num_scalar_prefetch=0,
            grid=(n_b, n_p),
            in_specs=[
                pl.BlockSpec((Bb, Cin, tile_p), lambda bi, pi: (bi, 0, pi)),
                pl.BlockSpec((Cout, Cin), lambda bi, pi: (0, 0)),
                pl.BlockSpec((Cout, 1), lambda bi, pi: (0, 0)),
            ],
            out_specs=pl.BlockSpec((Bb, Cout, tile_p),
                                   lambda bi, pi: (bi, 0, pi)),
        ),
        compiler_params=pltpu.CompilerParams(
            dimension_semantics=("parallel", "parallel"),
            vmem_limit_bytes=vmem_limit,
        ),
        cost_estimate=cost,
    )(x, w_c, b2)

    if P_pad != P:
        out_flat = out_flat[:, :, :P]
    return out_flat.reshape(B, Cout, H, W)


# ---------------------------------------------------------------------------
# Pure-JAX reference (same math, standard ops) for correctness checking
# ---------------------------------------------------------------------------
def outconv_reference(params, x_nchw):
    w = params["w"]
    b = params["b"]
    y = jnp.einsum("oc,bchw->bohw", w, x_nchw.astype(jnp.float32),
                   precision=lax.Precision.HIGHEST)
    return y + b[None, :, None, None]


if __name__ == "__main__":
    key = jax.random.PRNGKey(0)
    k_p, k_x, k_x2 = jax.random.split(key, 3)

    # OutConv(in_channels=8, out_channels=4) on a small NCHW batch.
    in_channels, out_channels = 8, 4
    B, H, W = 2, 16, 16

    params = init_params(k_p, in_channels, out_channels)
    x = jax.random.normal(k_x, (B, in_channels, H, W), jnp.float32)

    out = jax.block_until_ready(outconv_forward(params, x))
    ref = jax.block_until_ready(outconv_reference(params, x))
    assert out.shape == (B, out_channels, H, W), out.shape
    assert jnp.allclose(out, ref, atol=1e-2, rtol=1e-2), \
        float(jnp.max(jnp.abs(out - ref)))

    # Odd spatial size exercises the pad-to-128 / slice-back path.
    H2, W2 = 10, 10
    x2 = jax.random.normal(k_x2, (B, in_channels, H2, W2), jnp.float32)
    out2 = jax.block_until_ready(outconv_forward(params, x2))
    ref2 = jax.block_until_ready(outconv_reference(params, x2))
    assert out2.shape == (B, out_channels, H2, W2), out2.shape
    assert jnp.allclose(out2, ref2, atol=1e-2, rtol=1e-2), \
        float(jnp.max(jnp.abs(out2 - ref2)))

    print("KERNEL_OK")
</pallas_src>

<mosaic_0001>
module attributes {stable_mosaic.version = 11 : i64} {
  func.func @_outconv_kernel(%arg0: i32, %arg1: i32, %arg2: memref<1x8x256xf32, #tpu.memory_space<vmem>>, %arg3: memref<4x8xf32, #tpu.memory_space<vmem>>, %arg4: memref<4x1xf32, #tpu.memory_space<vmem>>, %arg5: memref<1x4x256xf32, #tpu.memory_space<vmem>>) attributes {dimension_semantics = [#tpu.dimension_semantics<parallel>, #tpu.dimension_semantics<parallel>], iteration_bounds = array<i64: 2, 1>, scalar_prefetch = 0 : i64, scratch_operands = 0 : i64, tpu.core_type = #tpu.core_type<tc>, window_params = [{transform_indices = @transform_0, window_bounds = array<i64: 1, 8, 256>}, {pipeline_mode = #tpu.pipeline_mode<synchronous>, transform_indices = @transform_1, window_bounds = array<i64: 4, 8>}, {pipeline_mode = #tpu.pipeline_mode<synchronous>, transform_indices = @transform_2, window_bounds = array<i64: 4, 1>}, {transform_indices = @transform_3, window_bounds = array<i64: 1, 4, 256>}]} {
    %c0 = arith.constant 0 : index
    %c0_0 = arith.constant 0 : index
    %0 = vector.load %arg3[%c0, %c0_0] : memref<4x8xf32, #tpu.memory_space<vmem>>, vector<4x8xf32>
    %c0_1 = arith.constant 0 : index
    %c0_2 = arith.constant 0 : index
    %c0_3 = arith.constant 0 : index
    %1 = vector.load %arg2[%c0_1, %c0_2, %c0_3] : memref<1x8x256xf32, #tpu.memory_space<vmem>>, vector<1x8x256xf32>
    "tpu.trace_start"() <{level = 10 : i32, message = "oc,bcp->bop"}> : () -> ()
    %cst = arith.constant dense<0.000000e+00> : vector<1x256x4xf32>
    %2 = tpu.matmul %1, %0, %cst {dimension_numbers = #tpu.dot_dimension_numbers<[1], [1], [0, 2], [0], [0, 0, 0, 2, 1, 0], [], []>} : vector<1x8x256xf32>, vector<4x8xf32>, vector<1x256x4xf32> -> vector<1x256x4xf32>
    %3 = tpu.transpose %2, [0, 2, 1] : vector<1x256x4xf32> -> vector<1x4x256xf32>
    "tpu.trace_stop"() : () -> ()
    %c0_4 = arith.constant 0 : index
    %c0_5 = arith.constant 0 : index
    %4 = vector.load %arg4[%c0_4, %c0_5] : memref<4x1xf32, #tpu.memory_space<vmem>>, vector<4x1xf32>
    %5 = vector.shape_cast %4 : vector<4x1xf32> to vector<1x4x1xf32>
    %6 = vector.broadcast %5 : vector<1x4x1xf32> to vector<1x4x256xf32>
    %7 = arith.addf %3, %6 : vector<1x4x256xf32>
    %c0_6 = arith.constant 0 : index
    %c0_7 = arith.constant 0 : index
    %c0_8 = arith.constant 0 : index
    %8 = vector.load %arg5[%c0_6, %c0_7, %c0_8] : memref<1x4x256xf32, #tpu.memory_space<vmem>>, vector<1x4x256xf32>
    tpu.vector_store %arg5[%c0_6, %c0_7, %c0_8], %7 {strides = array<i32>} : memref<1x4x256xf32, #tpu.memory_space<vmem>>, vector<1x4x256xf32>,
    return
  }
  func.func @transform_0(%arg0: i32, %arg1: i32) -> (i32, i32, i32) {
    %c0_i32 = arith.constant 0 : i32
    %c0_i32_0 = arith.constant 0 : i32
    return %arg0, %c0_i32, %arg1 : i32, i32, i32
  }
  func.func @transform_1(%arg0: i32, %arg1: i32) -> (i32, i32) {
    %c0_i32 = arith.constant 0 : i32
    %c0_i32_0 = arith.constant 0 : i32
    %c0_i32_1 = arith.constant 0 : i32
    return %c0_i32, %c0_i32_0 : i32, i32
  }
  func.func @transform_2(%arg0: i32, %arg1: i32) -> (i32, i32) {
    %c0_i32 = arith.constant 0 : i32
    %c0_i32_0 = arith.constant 0 : i32
    %c0_i32_1 = arith.constant 0 : i32
    return %c0_i32, %c0_i32_0 : i32, i32
  }
  func.func @transform_3(%arg0: i32, %arg1: i32) -> (i32, i32, i32) {
    %c0_i32 = arith.constant 0 : i32
    %c0_i32_0 = arith.constant 0 : i32
    return %arg0, %c0_i32, %arg1 : i32, i32, i32
  }
}

</mosaic_0001>

<bundles_post_ra>
// kernel: tpu_custom_call.1
= control target key start
LH: loop header
LB: loop body
LE: loop exit
PB: predicated region body
PF: predicated region fallthrough
CT: control target
= control target key end

     0   :  { %8 = vsyncpa [#allocation3], 0  ;;  %s1088_s0 = inlined_call_operand.hbm [shape: f32[2,8,256], index: 0, kind: input, shape index: {}]   ;;  %s1089_s1 = inlined_call_operand.vmem [shape: f32[4,8], index: 1, kind: input, shape index: {}]   ;;  %s1090_s2 = inlined_call_operand.vmem [shape: f32[4,1], index: 2, kind: input, shape index: {}]   ;;  %s1091_s3 = inlined_call_operand.hbm [shape: f32[2,4,256], index: 3, kind: output, shape index: {}]  }
   0x1   :  { %10 = vsyncpa [#allocation3 + $0x1], 0 }
   0x2   :  { %11 = vsyncpa [#allocation4], 0 }
   0x3   :  { %13 = vsyncpa [#allocation4 + $0x1], 0  ;;  %s925_s12 = smov 0   ;;  %s927_s13 = smov 0  }
   0x4   :  { %s929_s14 = smov 0   ;;  %s931_s15 = smov 0  }
   0x5   :  { %s933_s16 = smov 0   ;;  %s935_s17 = smov 0  }
   0x6 LB: > { %s671_s18 = sadd.s32 4294967295, %s902_s17   ;;  %s672_s19 = sadd.s32 4294967294, %s902_s17   ;;  %s902_s17 = sphi %s935_s17, %s19_s17   ;;  %s898_s16 = sphi %s933_s16, %s1100_s16   ;;  %s894_s15 = sphi %s931_s15, %s1099_s15   ;;  %s890_s14 = sphi %s929_s14, %s1098_s14   ;;  %s886_s13 = sphi %s927_s13, %s1097_s13   ;;  %s882_s12 = sphi %s925_s12, %s1096_s12  }
   0x7   : > { %s31_s20 = sadd.s32 1, %s898_s16  ;;  %s40_s21 = sadd.s32 1, %s890_s14 }
   0x8   : > { %p33_p0 = scmp.ge.s32.totalorder %s31_s20, 2  ;;  %p47_p1 = scmp.ne.s32.totalorder %s890_s14, %s886_s13 }
   0x9   : > { %p48_p2 = scmp.eq.s32.totalorder %s902_s17, 0  ;;  %p53_p3 = scmp.ne.s32.totalorder %s886_s13, %s882_s12 }
   0xa   : > { %s1102_s20 = smov (%p33_p0, %s31_s20), 0  ;;  %p54_p5 = scmp.eq.s32.totalorder %s671_s18, 0 }
   0xb   : > { %p966_p4 = por %p48_p2, %p47_p1  ;;  %s35_s23 = ssub.s32 %s898_s16, %s1102_s20 }
   0xc   : > { %p121_p6 = scmp.eq.s32.totalorder %s671_s18, 1  ;;  %p38_p7 = scmp.eq.s32.totalorder %s35_s23, 0 }
   0xd   : > { %p972_p8 = por %p54_p5, %p53_p3  ;;  %p127_p10 = scmp.eq.s32.totalorder %s672_s19, 1 }
   0xe   : > { %p976_p9 = por %p121_p6, %p47_p1  ;;  %p674_p12 = scmp.ge.s32.totalorder %s902_s17, 2 }
   0xf   : > { %s981_s26 = scalar_select %p38_p7, %s890_s14, %s40_s21  }
  0x10   : > { %p983_p11 = por %p127_p10, %p53_p3  ;;  %p736_p13 = scmp.lt.s32.totalorder %s902_s17, 2 }
  0x11   : > { %s153_s28 = sand.u32 1, %s890_s14   ;;  %s719_s30 = sshll.u32 %s898_s16, 4 }
  0x12   : > { %s675_s29 = sshll.u32 %s153_s28, 4  ;;  %s164_s6 = scalar_lea.hbm %s1088_s0, %s719_s30 }
  0x13   : > { %s157_s7 = scalar_lea.vmem [#allocation2], %s675_s29  ;;  %s166_s9 = sshll.u32 %s164_s6, 4  ;;  %s167_s9 = int_to_ptr.hbm [resolvable:$true] %s166_s9 }
  0x14   : > { %s168_s8 = sshll.u32 %s157_s7, 4  ;;  %p729_p0 = pnand %p736_p13, %p966_p4  ;;  %s169_s8 = int_to_ptr.vmem [resolvable:$true] %s168_s8 }
  0x15   : > { %p678_p1 = scmp.ge.s32.totalorder %s902_s17, 1  ;;  %p173_p2 = scmp.lt.s32.totalorder %s902_s17, 3 }
  0x16   : > { %s154_s10 = scalar_lea.sflag [#allocation3], %s153_s28 }
  0x17   : > { %731 = dma.hbm_to_vmem [thread:$0]  (!%p729_p0), %s167_s9, 256, %s169_s8, %s154_s10  }
  0x18   : > { %p174_p3 = pnand %p678_p1, %p173_p2 }
  0x19   : > { %s999_s11 = sand.u32 (!%p174_p3), 1, %s886_s13  }
  0x1a   : > { %177 = sbr.rel (%p174_p3) target bundleno = 785 (0x311), region = 32  ;;  %s679_s18 = sshll.u32 (!%p174_p3), %s999_s11, 4 }
  0x1b   : > { %s180_s19 = scalar_lea.sflag (!%p174_p3), [#allocation3], %s999_s11  ;;  %s183_s21 = scalar_lea.vmem (!%p174_p3), [#allocation2], %s679_s18 }
  0x1f   : > { %873 = dma.done.wait (%p972_p8), %s180_s19, 256  }
  0x20   : > { %875 = vsyncadd (%p972_p8), %s180_s19, 4294967040  ;;  %v211_v0 = vld [vmem:[%s183_s21 + $0x8] sm:$0xff]  ;;  %v209_v1 = vld [vmem:[%s1089_s1] sm:$0xf]  ;;  %vm276_vm0 = vcmask 64512   ;;  %v904_v63 = vmov 0  }
  0x21   : > { %244 = vxpose.xlu0.b32.start.end [1/1] (short) %v211_v0, 128  ;;  %722 = vmatpush.xpose.msk.msra.mxu2 %vm276_vm0, %v209_v1  ;;  %v210_v2 = vld [vmem:[%s183_s21] sm:$0xff]  ;;  %s680_s29 = sshll.u32 %s999_s11, 3  ;;  %s720_s30 = sshll.u32 %s894_s15, 3  ;;  %vm564_vm1 = vcmask 1043456  }
  0x22   : > { %723 = vmatpush.xpose.msk.msra.mxu3 %vm276_vm0, %v209_v1  ;;  %681 = vmatpush.xpose.msk.msra.mxu0 %vm276_vm0, %v209_v1  ;;  %s582_s6 = scalar_lea.hbm %s1091_s3, %s720_s30  ;;  %s206_s7 = scalar_lea.vmem [#allocation5], %s680_s29 }
  0x23   : > { %721 = vmatpush.xpose.msk.msra.mxu1 %vm276_vm0, %v209_v1  ;;  %s584_s8 = sshll.u32 %s206_s7, 4  ;;  %s586_s9 = sshll.u32 %s582_s6, 4  ;;  %s585_s8 = int_to_ptr.vmem [resolvable:$true] %s584_s8  ;;  %s587_s9 = int_to_ptr.hbm [resolvable:$true] %s586_s9 }
  0x24   : > { %s569_s10 = scalar_lea.sflag [#allocation4], %s999_s11  ;;  %s834_s15 = sshra.s32 %s587_s9, 4  ;;  %s835_s15 = int_to_ptr.hbm [resolvable:$true] %s834_s15 }
  0x25   : > { %s836_s18 = scalar_lea.hbm %s835_s15, 8  ;;  %s840_s22 = scalar_lea.hbm %s1091_s3, 16 }
  0x26   : > { %p837_p4 = scmp.ne.s32.totalorder %s835_s15, %s836_s18  ;;  %p841_p7 = scmp.lt.s32.totalorder %s835_s15, %s1091_s3 }
  0x27   : > { %p842_p8 = scmp.lt.s32.totalorder %s840_s22, %s836_s18 }
  0x28   : > { %p838_p5 = pnand %p837_p4, %p976_p9 }
  0x29   : > { %p843_p10 = por %p842_p8, %p841_p7 }
  0x2a   : > { %p839_p6 = pneg %p838_p5 }
  0x2c   : > { %p844_p13 = pnand %p843_p10, %p839_p6 }
  0xa1   : > { %212 = vxpose.xlu0.b32.start.end [1/1] (short) %v210_v2, 128 }
  0xc5   : > { %v260_v3 = vpop.trf.xlu0 }
  0xc6   : > { %698 = vmatmul.msk.f32.vlgmr.msra.gmra.mxu2 %vm276_vm0, %v260_v3 }
  0xcd   : > { %v261_v4 = vpop.trf.xlu0 }
  0xce   : > { %699 = vmatmul.msk.f32.gmra.mxu2 %vm276_vm0, %v261_v4  ;;  %v553_v4 = vld [vmem:[%s1090_s2] sm:$0xf] }
  0xd5   : > { %v262_v5 = vpop.trf.xlu0 }
  0xd6   : > { %700 = vmatmul.msk.f32.gmra.mxu2 %vm276_vm0, %v262_v5 }
  0xdd   : > { %v263_v6 = vpop.trf.xlu0 }
  0xde   : > { %701 = vmatmul.msk.f32.gmra.mxu2 %vm276_vm0, %v263_v6 }
  0xe5   : > { %v264_v7 = vpop.trf.xlu0 }
  0xe6   : > { %702 = vmatmul.msk.f32.gmra.mxu2 %vm276_vm0, %v264_v7 }
  0xed   : > { %v265_v8 = vpop.trf.xlu0 }
  0xee   : > { %703 = vmatmul.msk.f32.gmra.mxu2 %vm276_vm0, %v265_v8 }
  0xf5   : > { %v266_v9 = vpop.trf.xlu0 }
  0xf6   : > { %704 = vmatmul.msk.f32.gmra.mxu2 %vm276_vm0, %v266_v9 }
  0xfd   : > { %v267_v10 = vpop.trf.xlu0 }
  0xfe   : > { %705 = vmatmul.msk.f32.gmra.mxu2 %vm276_vm0, %v267_v10 }
 0x105   : > { %v268_v11 = vpop.trf.xlu0 }
 0x106   : > { %706 = vmatmul.msk.f32.vlgmr.msra.gmra.mxu3 %vm276_vm0, %v268_v11 }
 0x108   : > { %789 = vset.pattern.permute.xlu0 %v904_v63 }
 0x10d   : > { %v269_v12 = vpop.trf.xlu0 }
 0x10e   : > { %707 = vmatmul.msk.f32.gmra.mxu3 %vm276_vm0, %v269_v12 }
 0x115   : > { %v270_v13 = vpop.trf.xlu0 }
 0x116   : > { %708 = vmatmul.msk.f32.gmra.mxu3 %vm276_vm0, %v270_v13 }
 0x11d   : > { %v271_v14 = vpop.trf.xlu0 }
 0x11e   : > { %709 = vmatmul.msk.f32.gmra.mxu3 %vm276_vm0, %v271_v14 }
 0x125   : > { %v272_v15 = vpop.trf.xlu0 }
 0x126   : > { %710 = vmatmul.msk.f32.gmra.mxu3 %vm276_vm0, %v272_v15 }
 0x12d   : > { %v273_v16 = vpop.trf.xlu0 }
 0x12e   : > { %711 = vmatmul.msk.f32.gmra.mxu3 %vm276_vm0, %v273_v16 }
 0x135   : > { %v274_v17 = vpop.trf.xlu0 }
 0x136   : > { %712 = vmatmul.msk.f32.gmra.mxu3 %vm276_vm0, %v274_v17 }
 0x13d   : > { %v275_v18 = vpop.trf.xlu0 }
 0x13e   : > { %713 = vmatmul.msk.f32.gmra.mxu3 %vm276_vm0, %v275_v18 }
 0x145   : > { %v228_v19 = vpop.trf.xlu0 }
 0x146   : > { %682 = vmatmul.msk.f32.vlgmr.msra.gmra.mxu0 %vm276_vm0, %v228_v19 }
 0x149   : > { %v441_v20 = vpop.f32.mrf.mxu2 }
 0x14a   : > { %521 = vxpose.xlu2.b32.start [1/16] (narrow) %v441_v20, 8 }
 0x14d   : > { %v229_v21 = vpop.trf.xlu0 }
 0x14e   : > { %683 = vmatmul.msk.f32.gmra.mxu0 %vm276_vm0, %v229_v21 }
 0x151   : > { %v444_v22 = vpop.f32.mrf.mxu2 }
 0x152   : > { %522 = vxpose.xlu2.b32.cont [2/16] (narrow) %v444_v22, 8 }
 0x155   : > { %v230_v23 = vpop.trf.xlu0 }
 0x156   : > { %684 = vmatmul.msk.f32.gmra.mxu0 %vm276_vm0, %v230_v23 }
 0x159   : > { %v447_v24 = vpop.f32.mrf.mxu2 }
 0x15a   : > { %523 = vxpose.xlu2.b32.cont [3/16] (narrow) %v447_v24, 8 }
 0x15d   : > { %v231_v25 = vpop.trf.xlu0 }
 0x15e   : > { %685 = vmatmul.msk.f32.gmra.mxu0 %vm276_vm0, %v231_v25 }
 0x161   : > { %v450_v26 = vpop.f32.mrf.mxu2 }
 0x162   : > { %524 = vxpose.xlu2.b32.cont [4/16] (narrow) %v450_v26, 8 }
 0x165   : > { %v232_v27 = vpop.trf.xlu0 }
 0x166   : > { %686 = vmatmul.msk.f32.gmra.mxu0 %vm276_vm0, %v232_v27 }
 0x169   : > { %v453_v28 = vpop.f32.mrf.mxu2 }
 0x16a   : > { %525 = vxpose.xlu2.b32.cont [5/16] (narrow) %v453_v28, 8 }
 0x16d   : > { %v233_v29 = vpop.trf.xlu0 }
 0x16e   : > { %687 = vmatmul.msk.f32.gmra.mxu0 %vm276_vm0, %v233_v29 }
 0x171   : > { %v456_v30 = vpop.f32.mrf.mxu2 }
 0x172   : > { %526 = vxpose.xlu2.b32.cont [6/16] (narrow) %v456_v30, 8 }
 0x175   : > { %v234_v31 = vpop.trf.xlu0 }
 0x176   : > { %688 = vmatmul.msk.f32.gmra.mxu0 %vm276_vm0, %v234_v31 }
 0x179   : > { %v459_v32 = vpop.f32.mrf.mxu2 }
 0x17a   : > { %527 = vxpose.xlu2.b32.cont [7/16] (narrow) %v459_v32, 8 }
 0x17d   : > { %v235_v33 = vpop.trf.xlu0 }
 0x17e   : > { %689 = vmatmul.msk.f32.gmra.mxu0 %vm276_vm0, %v235_v33 }
 0x181   : > { %v462_v34 = vpop.f32.mrf.mxu2 }
 0x182   : > { %528 = vxpose.xlu2.b32.cont [8/16] (narrow) %v462_v34, 8 }
 0x185   : > { %v236_v35 = vpop.trf.xlu0 }
 0x186   : > { %690 = vmatmul.msk.f32.vlgmr.msra.gmra.mxu1 %vm276_vm0, %v236_v35 }
 0x189   : > { %v465_v36 = vpop.f32.mrf.mxu3 }
 0x18a   : > { %529 = vxpose.xlu2.b32.cont [9/16] (narrow) %v465_v36, 8 }
 0x18d   : > { %v237_v37 = vpop.trf.xlu0 }
 0x18e   : > { %691 = vmatmul.msk.f32.gmra.mxu1 %vm276_vm0, %v237_v37 }
 0x191   : > { %v468_v38 = vpop.f32.mrf.mxu3 }
 0x192   : > { %530 = vxpose.xlu2.b32.cont [10/16] (narrow) %v468_v38, 8 }
 0x195   : > { %v238_v39 = vpop.trf.xlu0 }
 0x196   : > { %692 = vmatmul.msk.f32.gmra.mxu1 %vm276_vm0, %v238_v39 }
 0x199   : > { %v471_v40 = vpop.f32.mrf.mxu3 }
 0x19a   : > { %531 = vxpose.xlu2.b32.cont [11/16] (narrow) %v471_v40, 8 }
 0x19d   : > { %v239_v41 = vpop.trf.xlu0 }
 0x19e   : > { %693 = vmatmul.msk.f32.gmra.mxu1 %vm276_vm0, %v239_v41 }
 0x1a1   : > { %v474_v42 = vpop.f32.mrf.mxu3 }
 0x1a2   : > { %532 = vxpose.xlu2.b32.cont [12/16] (narrow) %v474_v42, 8 }
 0x1a5   : > { %v240_v43 = vpop.trf.xlu0 }
 0x1a6   : > { %694 = vmatmul.msk.f32.gmra.mxu1 %vm276_vm0, %v240_v43 }
 0x1a9   : > { %v477_v44 = vpop.f32.mrf.mxu3 }
 0x1aa   : > { %533 = vxpose.xlu2.b32.cont [13/16] (narrow) %v477_v44, 8 }
 0x1ad   : > { %v241_v45 = vpop.trf.xlu0 }
 0x1ae   : > { %695 = vmatmul.msk.f32.gmra.mxu1 %vm276_vm0, %v241_v45 }
 0x1b1   : > { %v480_v46 = vpop.f32.mrf.mxu3 }
 0x1b2   : > { %534 = vxpose.xlu2.b32.cont [14/16] (narrow) %v480_v46, 8 }
 0x1b5   : > { %v242_v47 = vpop.trf.xlu0 }
 0x1b6   : > { %696 = vmatmul.msk.f32.gmra.mxu1 %vm276_vm0, %v242_v47 }
 0x1b9   : > { %v483_v48 = vpop.f32.mrf.mxu3 }
 0x1ba   : > { %535 = vxpose.xlu2.b32.cont [15/16] (narrow) %v483_v48, 8 }
 0x1bd   : > { %v243_v49 = vpop.trf.xlu0 }
 0x1be   : > { %697 = vmatmul.msk.f32.gmra.mxu1 %vm276_vm0, %v243_v49 }
 0x1c1   : > { %v486_v50 = vpop.f32.mrf.mxu3 }
 0x1c2   : > { %536 = vxpose.xlu2.b32.end [16/16] (narrow) %v486_v50, 8 }
 0x1c3   : > { %v393_v51 = vpop.f32.mrf.mxu0 }
 0x1c4   : > { %489 = vxpose.xlu1.b32.start [1/16] (narrow) %v393_v51, 8 }
 0x1cb   : > { %v396_v52 = vpop.f32.mrf.mxu0 }
 0x1cc   : > { %490 = vxpose.xlu1.b32.cont [2/16] (narrow) %v396_v52, 8 }
 0x1d3   : > { %v399_v53 = vpop.f32.mrf.mxu0 }
 0x1d4   : > { %491 = vxpose.xlu1.b32.cont [3/16] (narrow) %v399_v53, 8 }
 0x1db   : > { %v402_v54 = vpop.f32.mrf.mxu0 }
 0x1dc   : > { %492 = vxpose.xlu1.b32.cont [4/16] (narrow) %v402_v54, 8 }
 0x1e3   : > { %v405_v55 = vpop.f32.mrf.mxu0  ;;  %v537_v6 = vpop.trf.xlu2 }
 0x1e4   : > { %493 = vxpose.xlu1.b32.cont [5/16] (narrow) %v405_v55, 8 }
 0x1eb   : > { %v408_v56 = vpop.f32.mrf.mxu0 }
 0x1ec   : > { %494 = vxpose.xlu1.b32.cont [6/16] (narrow) %v408_v56, 8 }
 0x1f3   : > { %v411_v57 = vpop.f32.mrf.mxu0 }
 0x1f4   : > { %495 = vxpose.xlu1.b32.cont [7/16] (narrow) %v411_v57, 8 }
 0x1fb   : > { %v414_v58 = vpop.f32.mrf.mxu0 }
 0x1fc   : > { %496 = vxpose.xlu1.b32.cont [8/16] (narrow) %v414_v58, 8 }
 0x203   : > { %v417_v59 = vpop.f32.mrf.mxu1 }
 0x204   : > { %497 = vxpose.xlu1.b32.cont [9/16] (narrow) %v417_v59, 8 }
 0x20b   : > { %v420_v60 = vpop.f32.mrf.mxu1 }
 0x20c   : > { %498 = vxpose.xlu1.b32.cont [10/16] (narrow) %v420_v60, 8 }
 0x213   : > { %v423_v61 = vpop.f32.mrf.mxu1 }
 0x214   : > { %499 = vxpose.xlu1.b32.cont [11/16] (narrow) %v423_v61, 8 }
 0x21b   : > { %v426_v62 = vpop.f32.mrf.mxu1 }
 0x21c   : > { %500 = vxpose.xlu1.b32.cont [12/16] (narrow) %v426_v62, 8 }
 0x223   : > { %v429_v0 = vpop.f32.mrf.mxu1 }
 0x224   : > { %501 = vxpose.xlu1.b32.cont [13/16] (narrow) %v429_v0, 8 }
 0x22b   : > { %v432_v1 = vpop.f32.mrf.mxu1 }
 0x22c   : > { %502 = vxpose.xlu1.b32.cont [14/16] (narrow) %v432_v1, 8 }
 0x233   : > { %v435_v2 = vpop.f32.mrf.mxu1 }
 0x234   : > { %503 = vxpose.xlu1.b32.cont [15/16] (narrow) %v435_v2, 8 }
 0x23b   : > { %v438_v3 = vpop.f32.mrf.mxu1 }
 0x23c   : > { %504 = vxpose.xlu1.b32.end [16/16] (narrow) %v438_v3, 8 }
 0x268   : > { %v505_v5 = vpop.trf.xlu1 }
 0x28f   : > { %788 = vset.pattern.permute.xlu1 %v904_v63 }
 0x296   : > { %556 = vperm.xlu1 %788, %v553_v4  }
 0x308   : > { %v557_v7 = vpop.permute.xlu1 %556 }
 0x309   : > { %v560_v8 = vadd.f32 %v557_v7, %v537_v6  ;;  %v559_v9 = vadd.f32 %v557_v7, %v505_v5 }
 0x30b   : > { %v563_v10 = vrot.slane %v560_v8, 4 }
 0x30d   : > { %v565_v11 = vsel %vm564_vm1, %v559_v9, %v563_v10 }
 0x30e   : > { %567 = vst [vmem:[%s206_s7] sm:$0xff] %v565_v11 }
 0x30f   : > { %847 = shalt.err (!%p844_p13)
}
 0x310   : > { %726 = dma.vmem_to_hbm [thread:$0]  (%p976_p9), %s585_s8, 128, %s587_s9, %s569_s10  }
 0x311 PF: > { %s598_s11 = sand.u32 1, %s882_s12   ;;  %p733_p0 = pnand %p674_p12, %p983_p11 }
 0x312   : > { %s599_s28 = scalar_lea.sflag [#allocation4], %s598_s11 }
 0x313   : > { %p734_p1 = pneg %p733_p0 }
 0x315   : > { %877 = dma.done.wait (%p734_p1), %s599_s28, 128  }
 0x316   : > { %879 = vsyncadd (%p734_p1), %s599_s28, 4294967168  ;;  %s19_s17 = sadd.s32 1, %s902_s17   ;;  %s1096_s12 = smov %s886_s13 }
 0x317   : > { %p16_p2 = scmp.ge.s32.totalorder %s19_s17, 4   ;;  %s1097_s13 = smov %s890_s14 }
 0x318   : > { %s1098_s14 = smov %s981_s26  ;;  %s1099_s15 = smov %s898_s16 }
 0x319   : > { %s1100_s16 = smov %s1102_s20  ;;  %18 = sbr.rel (!%p16_p2) target bundleno = 6 (0x6), region = 77 }
 0x31e   :  { %605 = vsyncpa [#allocation3], 1 }
 0x31f   :  { %607 = vsyncpa [#allocation3 + $0x1], 1 }
 0x320   :  { %608 = vsyncpa [#allocation4], 1 }
 0x321   :  { %610 = vsyncpa [#allocation4 + $0x1], 1 }

</bundles_post_ra>
